<compile_context>
chip_gen: v7x
topology: tpu7x:2x2x1
jax: 0.10.0
libtpu: 0.0.40
codegen_flags: <defaults>
</compile_context>

<pallas_src>
import functools

import jax
import jax.numpy as jnp
from jax.experimental import pallas as pl
from jax.experimental.pallas import tpu as pltpu

BN_EPS = 1e-5


def _round_up(x, m):
    return (x + m - 1) // m * m


def _pass1_kernel(x_ref, res_ref, w_ref, b_ref, z_ref, stats_ref, *,
                  tm, n_valid, use_bf16):
    """Per row-tile: z = x @ W^T + b + res; accumulate channel sum / sumsq."""
    i = pl.program_id(0)

    @pl.when(i == 0)
    def _():
        stats_ref[...] = jnp.zeros_like(stats_ref)

    x = x_ref[...]
    w = w_ref[...]
    if use_bf16:
        x = x.astype(jnp.bfloat16)
        w = w.astype(jnp.bfloat16)
    y = jnp.dot(x, w, preferred_element_type=jnp.float32)   # MXU, f32 acc
    z = y + b_ref[...] + res_ref[...]
    # TODO(synk): training-mode dropout mask (pltpu.prng_random_bits) not emitted.
    z_ref[...] = z

    # Mask rows beyond the true N so zero-padding does not bias the statistics.
    row = i * tm + jax.lax.broadcasted_iota(jnp.int32, z.shape, 0)
    zm = jnp.where(row < n_valid, z, 0.0)
    stats_ref[0:1, :] += jnp.sum(zm, axis=0, keepdims=True)
    stats_ref[1:2, :] += jnp.sum(zm * zm, axis=0, keepdims=True)


def _pass2_kernel(z_ref, stats_ref, g_ref, beta_ref, o_ref, *, n_valid):
    """Per row-tile: normalize z with the global batch statistics (in place)."""
    inv_n = 1.0 / float(n_valid)
    mean = stats_ref[0:1, :] * inv_n
    var = jnp.maximum(stats_ref[1:2, :] * inv_n - mean * mean, 0.0)
    scale = jax.lax.rsqrt(var + BN_EPS) * g_ref[...]          # (1, H)
    shift = beta_ref[...] - mean * scale                      # (1, H)
    o_ref[...] = (z_ref[...] * scale + shift).astype(o_ref.dtype)
    # TODO(synk): BatchNorm1d running-stats (unbiased var) update not implemented.


def pcl_self_output(hidden_states, input_tensor, w, b, gamma, beta, *,
                    use_bf16_matmul=True):
    """hidden_states, input_tensor: (B, S, H). w: (H, H) PyTorch Linear weight."""
    B, S, H = hidden_states.shape
    N = B * S
    Hp = _round_up(H, 128)                       # lane-dense hidden dim

    # Row tile: as large as fits a ~20 MiB activation budget (x/res/z double
    # buffered), capped at 1024, floored at 256, then clipped to the problem.
    per_row_bytes = 3 * 2 * Hp * 4
    tm = (20 * 1024 * 1024) // per_row_bytes // 256 * 256
    tm = max(256, min(1024, tm))
    tm = min(tm, _round_up(N, 8))
    Np = _round_up(N, tm)
    n_tiles = Np // tm

    f32 = jnp.float32
    x2d = jnp.pad(hidden_states.reshape(N, H).astype(f32),
                  ((0, Np - N), (0, Hp - H)))
    r2d = jnp.pad(input_tensor.reshape(N, H).astype(f32),
                  ((0, Np - N), (0, Hp - H)))
    # One-time weight layout fixup (pad + transpose) so the MXU consumes x @ wT
    # directly; in a real model this is constant-folded / cached outside the
    # per-step hot path, and it is O(H^2) vs O(N*H^2) of work.
    wT = jnp.pad(w.astype(f32), ((0, Hp - H), (0, Hp - H))).T
    b2 = jnp.pad(b.astype(f32), (0, Hp - H)).reshape(1, Hp)
    g2 = jnp.pad(gamma.astype(f32), (0, Hp - H)).reshape(1, Hp)
    be2 = jnp.pad(beta.astype(f32), (0, Hp - H)).reshape(1, Hp)

    # Explicit VMEM budget: double-buffered x/res/z tiles + resident weight,
    # with headroom; stays under v7x's 64 MiB physical VMEM.
    vmem_est = (3 * 2 * tm * Hp + 2 * Hp * Hp + 8 * Hp) * 4
    vmem_limit = int(min(max(vmem_est * 5 // 4, 16 * 1024 * 1024),
                         48 * 1024 * 1024))

    # ---- Pass 1: dense + residual, per-channel sum/sumsq accumulation ----
    z, stats = pl.pallas_call(
        functools.partial(_pass1_kernel, tm=tm, n_valid=N,
                          use_bf16=use_bf16_matmul),
        out_shape=(jax.ShapeDtypeStruct((Np, Hp), f32),
                   jax.ShapeDtypeStruct((2, Hp), f32)),
        grid=(n_tiles,),
        in_specs=[
            pl.BlockSpec((tm, Hp), lambda i: (i, 0)),   # x tile
            pl.BlockSpec((tm, Hp), lambda i: (i, 0)),   # residual tile
            pl.BlockSpec((Hp, Hp), lambda i: (0, 0)),   # weight, resident
            pl.BlockSpec((1, Hp), lambda i: (0, 0)),    # bias, resident
        ],
        out_specs=(
            pl.BlockSpec((tm, Hp), lambda i: (i, 0)),   # z tile
            pl.BlockSpec((2, Hp), lambda i: (0, 0)),    # stats accumulator
        ),
        compiler_params=pltpu.CompilerParams(
            dimension_semantics=("arbitrary",),
            vmem_limit_bytes=vmem_limit),
        cost_estimate=pl.CostEstimate(
            flops=2 * Np * Hp * Hp + 4 * Np * Hp,
            transcendentals=0,
            bytes_accessed=(3 * Np * Hp + Hp * Hp + Hp) * 4),
    )(x2d, r2d, wT, b2)

    # ---- Pass 2: normalize in place (z buffer aliased to the output) ----
    out = pl.pallas_call(
        functools.partial(_pass2_kernel, n_valid=N),
        out_shape=jax.ShapeDtypeStruct((Np, Hp), f32),
        grid=(n_tiles,),
        in_specs=[
            pl.BlockSpec((tm, Hp), lambda i: (i, 0)),   # z tile
            pl.BlockSpec((2, Hp), lambda i: (0, 0)),    # stats, resident
            pl.BlockSpec((1, Hp), lambda i: (0, 0)),    # gamma
            pl.BlockSpec((1, Hp), lambda i: (0, 0)),    # beta
        ],
        out_specs=pl.BlockSpec((tm, Hp), lambda i: (i, 0)),
        input_output_aliases={0: 0},
        compiler_params=pltpu.CompilerParams(
            dimension_semantics=("parallel",),
            vmem_limit_bytes=vmem_limit),
        cost_estimate=pl.CostEstimate(
            flops=3 * Np * Hp,
            transcendentals=Hp,
            bytes_accessed=2 * Np * Hp * 4),
    )(z, stats, g2, be2)

    return out[:N, :H].reshape(B, S, H)


def _reference(hidden_states, input_tensor, w, b, gamma, beta):
    y = hidden_states @ w.T + b
    z = y + input_tensor
    zt = z.reshape(-1, z.shape[-1])
    mean = zt.mean(axis=0)
    var = ((zt - mean) ** 2).mean(axis=0)       # biased var (BN normalization)
    norm = (zt - mean) / jnp.sqrt(var + BN_EPS)
    out = norm * gamma + beta
    return out.reshape(z.shape)


if __name__ == "__main__":
    B, S, H = 2, 8, 32

    key = jax.random.PRNGKey(0)
    k_x, k_r, k_w, k_b, k_g, k_be = jax.random.split(key, 6)

    hidden_states = jax.random.normal(k_x, (B, S, H), dtype=jnp.float32)
    input_tensor = jax.random.normal(k_r, (B, S, H), dtype=jnp.float32)

    bound = 1.0 / (H ** 0.5)
    w = jax.random.uniform(k_w, (H, H), jnp.float32, -bound, bound)
    b = jax.random.uniform(k_b, (H,), jnp.float32, -bound, bound)
    gamma = 1.0 + 0.1 * jax.random.normal(k_g, (H,), jnp.float32)
    beta = 0.1 * jax.random.normal(k_be, (H,), jnp.float32)

    ref = _reference(hidden_states, input_tensor, w, b, gamma, beta)

    # Strict check with an f32 matmul path.
    out_f32 = jax.block_until_ready(
        pcl_self_output(hidden_states, input_tensor, w, b, gamma, beta,
                        use_bf16_matmul=False))
    assert out_f32.shape == (B, S, H)
    assert jnp.allclose(out_f32, ref, atol=1e-4, rtol=1e-4), \
        float(jnp.abs(out_f32 - ref).max())

    # Performance path: bf16 MXU inputs, f32 accumulation (looser tolerance).
    out = jax.block_until_ready(
        pcl_self_output(hidden_states, input_tensor, w, b, gamma, beta,
                        use_bf16_matmul=True))
    assert out.shape == (B, S, H)
    assert jnp.allclose(out, ref, atol=5e-2, rtol=5e-2), \
        float(jnp.abs(out - ref).max())

    print("KERNEL_OK")
</pallas_src>

<mosaic_0001>
module attributes {stable_mosaic.version = 11 : i64} {
  func.func @_pass1_kernel(%arg0: i32, %arg1: memref<16x128xf32, #tpu.memory_space<vmem>>, %arg2: memref<16x128xf32, #tpu.memory_space<vmem>>, %arg3: memref<128x128xf32, #tpu.memory_space<vmem>>, %arg4: memref<1x128xf32, #tpu.memory_space<vmem>>, %arg5: memref<16x128xf32, #tpu.memory_space<vmem>>, %arg6: memref<2x128xf32, #tpu.memory_space<vmem>>) attributes {dimension_semantics = [#tpu.dimension_semantics<arbitrary>], iteration_bounds = array<i64: 1>, scalar_prefetch = 0 : i64, scratch_operands = 0 : i64, tpu.core_type = #tpu.core_type<tc>, window_params = [{transform_indices = @transform_0, window_bounds = array<i64: 16, 128>}, {transform_indices = @transform_1, window_bounds = array<i64: 16, 128>}, {pipeline_mode = #tpu.pipeline_mode<synchronous>, transform_indices = @transform_2, window_bounds = array<i64: 128, 128>}, {pipeline_mode = #tpu.pipeline_mode<synchronous>, transform_indices = @transform_3, window_bounds = array<i64: 1, 128>}, {transform_indices = @transform_4, window_bounds = array<i64: 16, 128>}, {pipeline_mode = #tpu.pipeline_mode<synchronous>, transform_indices = @transform_5, window_bounds = array<i64: 2, 128>}]} {
    %c0_i32 = arith.constant 0 : i32
    %0 = arith.cmpi eq, %arg0, %c0_i32 : i32
    %1 = arith.extui %0 : i1 to i32
    %c0_i32_0 = arith.constant 0 : i32
    %2 = arith.cmpi ne, %1, %c0_i32_0 : i32
    scf.if %2 {
      %cst_21 = arith.constant 0.000000e+00 : f32
      %31 = vector.broadcast %cst_21 : f32 to vector<2x128xf32>
      %c0_22 = arith.constant 0 : index
      %c0_23 = arith.constant 0 : index
      %32 = vector.load %arg6[%c0_22, %c0_23] : memref<2x128xf32, #tpu.memory_space<vmem>>, vector<2x128xf32>
      tpu.vector_store %arg6[%c0_22, %c0_23], %31 {strides = array<i32>} : memref<2x128xf32, #tpu.memory_space<vmem>>, vector<2x128xf32>,
    } else {
    }
    %c0 = arith.constant 0 : index
    %c0_1 = arith.constant 0 : index
    %3 = vector.load %arg1[%c0, %c0_1] : memref<16x128xf32, #tpu.memory_space<vmem>>, vector<16x128xf32>
    %c0_2 = arith.constant 0 : index
    %c0_3 = arith.constant 0 : index
    %4 = vector.load %arg3[%c0_2, %c0_3] : memref<128x128xf32, #tpu.memory_space<vmem>>, vector<128x128xf32>
    %cst = arith.constant dense<0.000000e+00> : vector<16x128xf32>
    %5 = tpu.matmul %3, %4, %cst {dimension_numbers = #tpu.dot_dimension_numbers<[1], [0], [0], [1], [0, 0, 1, 1], [], []>} : vector<16x128xf32>, vector<128x128xf32>, vector<16x128xf32> -> vector<16x128xf32>
    %c0_4 = arith.constant 0 : index
    %c0_5 = arith.constant 0 : index
    %6 = vector.load %arg4[%c0_4, %c0_5] : memref<1x128xf32, #tpu.memory_space<vmem>>, vector<1x128xf32>
    %7 = vector.broadcast %6 : vector<1x128xf32> to vector<16x128xf32>
    %8 = arith.addf %5, %7 : vector<16x128xf32>
    %c0_6 = arith.constant 0 : index
    %c0_7 = arith.constant 0 : index
    %9 = vector.load %arg2[%c0_6, %c0_7] : memref<16x128xf32, #tpu.memory_space<vmem>>, vector<16x128xf32>
    %10 = arith.addf %8, %9 : vector<16x128xf32>
    %c0_8 = arith.constant 0 : index
    %c0_9 = arith.constant 0 : index
    %11 = vector.load %arg5[%c0_8, %c0_9] : memref<16x128xf32, #tpu.memory_space<vmem>>, vector<16x128xf32>
    tpu.vector_store %arg5[%c0_8, %c0_9], %10 {strides = array<i32>} : memref<16x128xf32, #tpu.memory_space<vmem>>, vector<16x128xf32>,
    %c16_i32 = arith.constant 16 : i32
    %12 = arith.muli %arg0, %c16_i32 : i32
    %13 = tpu.iota {dimensions = array<i32: 0>} : vector<16x128xi32>
    %14 = vector.broadcast %12 : i32 to vector<16x128xi32>
    %15 = arith.addi %14, %13 : vector<16x128xi32>
    %c16_i32_10 = arith.constant 16 : i32
    %16 = vector.broadcast %c16_i32_10 : i32 to vector<16x128xi32>
    %17 = arith.cmpi slt, %15, %16 : vector<16x128xi32>
    %cst_11 = arith.constant 0.000000e+00 : f32
    %18 = vector.broadcast %cst_11 : f32 to vector<16x128xf32>
    %19 = arith.select %17, %10, %18 : vector<16x128xi1>, vector<16x128xf32>
    %c0_12 = arith.constant 0 : index
    %c0_13 = arith.constant 0 : index
    %20 = vector.load %arg6[%c0_12, %c0_13] : memref<2x128xf32, #tpu.memory_space<vmem>>, vector<1x128xf32>
    %cst_14 = arith.constant dense<0.000000e+00> : vector<128xf32>
    %21 = vector.multi_reduction <add>, %19, %cst_14 [0] : vector<16x128xf32> to vector<128xf32>
    %22 = vector.shape_cast %21 : vector<128xf32> to vector<1x128xf32>
    %23 = arith.addf %20, %22 : vector<1x128xf32>
    %c0_15 = arith.constant 0 : index
    %c0_16 = arith.constant 0 : index
    %24 = vector.load %arg6[%c0_15, %c0_16] : memref<2x128xf32, #tpu.memory_space<vmem>>, vector<1x128xf32>
    tpu.vector_store %arg6[%c0_15, %c0_16], %23 {strides = array<i32>} : memref<2x128xf32, #tpu.memory_space<vmem>>, vector<1x128xf32>,
    %c1 = arith.constant 1 : index
    %c0_17 = arith.constant 0 : index
    %25 = vector.load %arg6[%c1, %c0_17] : memref<2x128xf32, #tpu.memory_space<vmem>>, vector<1x128xf32>
    %26 = arith.mulf %19, %19 : vector<16x128xf32>
    %cst_18 = arith.constant dense<0.000000e+00> : vector<128xf32>
    %27 = vector.multi_reduction <add>, %26, %cst_18 [0] : vector<16x128xf32> to vector<128xf32>
    %28 = vector.shape_cast %27 : vector<128xf32> to vector<1x128xf32>
    %29 = arith.addf %25, %28 : vector<1x128xf32>
    %c1_19 = arith.constant 1 : index
    %c0_20 = arith.constant 0 : index
    %30 = vector.load %arg6[%c1_19, %c0_20] : memref<2x128xf32, #tpu.memory_space<vmem>>, vector<1x128xf32>
    tpu.vector_store %arg6[%c1_19, %c0_20], %29 {strides = array<i32>} : memref<2x128xf32, #tpu.memory_space<vmem>>, vector<1x128xf32>,
    return
  }
  func.func @transform_0(%arg0: i32) -> (i32, i32) {
    %c0_i32 = arith.constant 0 : i32
    %c0_i32_0 = arith.constant 0 : i32
    return %arg0, %c0_i32 : i32, i32
  }
  func.func @transform_1(%arg0: i32) -> (i32, i32) {
    %c0_i32 = arith.constant 0 : i32
    %c0_i32_0 = arith.constant 0 : i32
    return %arg0, %c0_i32 : i32, i32
  }
  func.func @transform_2(%arg0: i32) -> (i32, i32) {
    %c0_i32 = arith.constant 0 : i32
    %c0_i32_0 = arith.constant 0 : i32
    %c0_i32_1 = arith.constant 0 : i32
    return %c0_i32, %c0_i32_0 : i32, i32
  }
  func.func @transform_3(%arg0: i32) -> (i32, i32) {
    %c0_i32 = arith.constant 0 : i32
    %c0_i32_0 = arith.constant 0 : i32
    %c0_i32_1 = arith.constant 0 : i32
    return %c0_i32, %c0_i32_0 : i32, i32
  }
  func.func @transform_4(%arg0: i32) -> (i32, i32) {
    %c0_i32 = arith.constant 0 : i32
    %c0_i32_0 = arith.constant 0 : i32
    return %arg0, %c0_i32 : i32, i32
  }
  func.func @transform_5(%arg0: i32) -> (i32, i32) {
    %c0_i32 = arith.constant 0 : i32
    %c0_i32_0 = arith.constant 0 : i32
    %c0_i32_1 = arith.constant 0 : i32
    return %c0_i32, %c0_i32_0 : i32, i32
  }
}

</mosaic_0001>

<bundles_post_ra>
// kernel: tpu_custom_call.1
= control target key start
LH: loop header
LB: loop body
LE: loop exit
PB: predicated region body
PF: predicated region fallthrough
CT: control target
= control target key end

     0   :  { %11 = vsyncpa [#allocation3], 0  ;;  %s570_s0 = inlined_call_operand.hbm [shape: f32[16,128], index: 0, kind: input, shape index: {}]   ;;  %s571_s1 = inlined_call_operand.hbm [shape: f32[16,128], index: 1, kind: input, shape index: {}]   ;;  %s572_s2 = inlined_call_operand.hbm [shape: f32[128,128], index: 2, kind: input, shape index: {}]   ;;  %s573_s3 = inlined_call_operand.vmem [shape: f32[1,128], index: 3, kind: input, shape index: {}]   ;;  %s574_s4 = inlined_call_operand.hbm [shape: f32[16,128], index: 4, kind: output, shape index: {0}]   ;;  %s575_s5 = inlined_call_operand.hbm [shape: f32[2,128], index: 5, kind: output, shape index: {1}]  }
   0x1   :  { %12 = vsyncpa [#allocation6], 0 }
   0x2   :  { %13 = vsyncpa [#allocation4], 0 }
   0x3   :  { %14 = vsyncpa [#allocation10], 0  ;;  %s450_s18 = smov [#allocation5]   ;;  %s451_s20 = smov [#allocation2]  }
   0x4   :  { %s32_s19 = sshll.u32 %s450_s18, 4  ;;  %s20_s21 = sshll.u32 %s451_s20, 4  ;;  %s33_s19 = int_to_ptr.vmem [resolvable:$true] %s32_s19  ;;  %s488_s21 = int_to_ptr.vmem [resolvable:$true] %s20_s21 }
   0x5   :  { %s332_s24 = scalar_lea.hbm %s571_s1, 256 }
   0x6   :  { %p333_p0 = scmp.ne.s32.totalorder %s571_s1, %s332_s24  ;;  %p336_p1 = scmp.lt.u32.totalorder %s332_s24, %s571_s1 }
   0x8   :  { %p338_p2 = pnand %p336_p1, %p333_p0 }
   0xa   :  { %341 = shalt.err (!%p338_p2)
}
   0xb   :  { %s342_s29 = scalar_lea.vmem %s33_s19, 256  ;;  %p347_p4 = scmp.lt.s32.totalorder %s33_s19, %s33_s19 }
   0xc   :  { %p343_p3 = scmp.ne.s32.totalorder %s33_s19, %s342_s29  ;;  %p348_p5 = scmp.lt.s32.totalorder %s342_s29, %s342_s29 }
   0xe   :  { %p349_p6 = por %p348_p5, %p347_p4 }
  0x10   :  { %p350_p7 = pnand %p349_p6, %p343_p3 }
  0x12   :  { %353 = shalt.err (!%p350_p7)
}
  0x13   :  { %s452_s30 = smov 128   ;;  %s453_s6 = smov 8  }
  0x14   :  { %38 = dma.hbm_to_vmem [thread:$0]  %s571_s1, 256, %s33_s19, [#allocation6], %s452_s30, %s452_s30, %s453_s6  }
  0x15   :  { %s354_s11 = scalar_lea.hbm %s570_s0, 256 }
  0x16   :  { %p355_p8 = scmp.ne.s32.totalorder %s570_s0, %s354_s11  ;;  %p358_p9 = scmp.lt.u32.totalorder %s354_s11, %s570_s0 }
  0x18   :  { %p360_p10 = pnand %p358_p9, %p355_p8 }
  0x1a   :  { %363 = shalt.err (!%p360_p10)
}
  0x1b   :  { %s364_s16 = scalar_lea.vmem %s488_s21, 256  ;;  %p369_p12 = scmp.lt.s32.totalorder %s488_s21, %s488_s21 }
  0x1c   :  { %p365_p11 = scmp.ne.s32.totalorder %s488_s21, %s364_s16  ;;  %p370_p13 = scmp.lt.s32.totalorder %s364_s16, %s364_s16 }
  0x1e   :  { %p371_p0 = por %p370_p13, %p369_p12 }
  0x20   :  { %p372_p1 = pnand %p371_p0, %p365_p11 }
  0x22   :  { %375 = shalt.err (!%p372_p1)
}
  0x23   :  { %26 = dma.hbm_to_vmem [thread:$0]  %s570_s0, 256, %s488_s21, [#allocation3], %s452_s30, %s452_s30, %s453_s6  }
  0x24   :  { %s454_s18 = smov [#allocation7]   ;;  %s376_s23 = scalar_lea.hbm %s572_s2, 2048 }
  0x25   :  { %s44_s19 = sshll.u32 %s454_s18, 4  ;;  %p377_p2 = scmp.ne.s32.totalorder %s572_s2, %s376_s23  ;;  %s45_s19 = int_to_ptr.vmem [resolvable:$true] %s44_s19 }
  0x26   :  { %p380_p3 = scmp.lt.u32.totalorder %s376_s23, %s572_s2 }
  0x28   :  { %p382_p4 = pnand %p380_p3, %p377_p2 }
  0x2a   :  { %385 = shalt.err (!%p382_p4)
}
  0x2b   :  { %s386_s28 = scalar_lea.vmem %s45_s19, 2048  ;;  %p391_p6 = scmp.lt.s32.totalorder %s45_s19, %s45_s19 }
  0x2c   :  { %p387_p5 = scmp.ne.s32.totalorder %s45_s19, %s386_s28  ;;  %p392_p7 = scmp.lt.s32.totalorder %s386_s28, %s386_s28 }
  0x2e   :  { %p393_p8 = por %p392_p7, %p391_p6 }
  0x30   :  { %p394_p9 = pnand %p393_p8, %p387_p5 }
  0x32   :  { %397 = shalt.err (!%p394_p9)
}
  0x33   :  { %50 = dma.hbm_to_vmem [thread:$0]  %s572_s2, 2048, %s45_s19, [#allocation6], %s452_s30, %s452_s30, %s453_s6  }
  0x34   :  { %442 = dma.done.wait [#allocation3], 256  }
  0x35   :  { %443 = vsyncadd [#allocation3], 4294967040 }
  0x36   :  { %444 = dma.done.wait [#allocation6], 2304  }
  0x37   :  { %445 = vsyncadd [#allocation6], 4294964992  ;;  %v69_v0 = vld [vmem:[#allocation7] sm:$0xff]  ;;  %v70_v1 = vld [vmem:[#allocation7 + $0x8] sm:$0xff]  ;;  %v455_v26 = vmov 0.0   ;;  %s456_s7 = smov [#allocation8]  }
  0x38   :  { %v71_v2 = vld [vmem:[#allocation7 + $0x10] sm:$0xff]  ;;  %v292_v3 = vpack.c.bf16 %v70_v1, %v69_v0  ;;  %v72_v4 = vld [vmem:[#allocation7 + $0x18] sm:$0xff]  ;;  %v73_v6 = vld [vmem:[#allocation7 + $0x20] sm:$0xff]  ;;  %66 = vst [vmem:[#allocation9] sm:$0x3] %v455_v26  ;;  %s211_s8 = sshll.u32 %s456_s7, 4  ;;  %s212_s8 = int_to_ptr.vmem [resolvable:$true] %s211_s8 }
  0x39   :  { %v296_v5 = vpack.c.bf16 %v72_v4, %v71_v2  ;;  %v74_v7 = vld [vmem:[#allocation7 + $0x28] sm:$0xff]  ;;  %v67_v9 = vld [vmem:[#allocation2] sm:$0xff]  ;;  %v75_v10 = vld [vmem:[#allocation7 + $0x30] sm:$0xff]  ;;  %s398_s9 = scalar_lea.vmem %s212_s8, 256  ;;  %p403_p11 = scmp.lt.s32.totalorder %s212_s8, %s212_s8 }
  0x3a   :  { %293 = vmatprep.subr.bf16.mxu0 %v292_v3  ;;  %v300_v8 = vpack.c.bf16 %v74_v7, %v73_v6  ;;  %v76_v11 = vld [vmem:[#allocation7 + $0x38] sm:$0xff]  ;;  %289 = vmatprep.mubr.f32.mxu0 %v67_v9  ;;  %v77_v13 = vld [vmem:[#allocation7 + $0x40] sm:$0xff]  ;;  %v78_v14 = vld [vmem:[#allocation7 + $0x48] sm:$0xff]  ;;  %p399_p10 = scmp.ne.s32.totalorder %s212_s8, %s398_s9  ;;  %p404_p12 = scmp.lt.s32.totalorder %s398_s9, %s398_s9 }
  0x3b   :  { %295 = vmatpush3.bf16.msra.mxu0 %v292_v3  ;;  %v304_v12 = vpack.c.bf16 %v76_v11, %v75_v10  ;;  %v308_v15 = vpack.c.bf16 %v78_v14, %v77_v13  ;;  %v79_v16 = vld [vmem:[#allocation7 + $0x50] sm:$0xff]  ;;  %v80_v17 = vld [vmem:[#allocation7 + $0x58] sm:$0xff]  ;;  %v81_v19 = vld [vmem:[#allocation7 + $0x60] sm:$0xff] }
  0x3c   :  { %297 = vmatprep.subr.bf16.mxu0 %v296_v5  ;;  %v312_v18 = vpack.c.bf16 %v80_v17, %v79_v16  ;;  %v82_v20 = vld [vmem:[#allocation7 + $0x68] sm:$0xff]  ;;  %v83_v22 = vld [vmem:[#allocation7 + $0x70] sm:$0xff]  ;;  %v84_v23 = vld [vmem:[#allocation7 + $0x78] sm:$0xff]  ;;  %p405_p13 = por %p404_p12, %p403_p11 }
  0x3d   :  { %v316_v21 = vpack.c.bf16 %v82_v20, %v81_v19  ;;  %v320_v24 = vpack.c.bf16 %v84_v23, %v83_v22  ;;  %v68_v25 = vld [vmem:[#allocation2 + $0x8] sm:$0xff]  ;;  %v238_v27 = vld [vmem:[%s573_s3] ss:$0 sm:$0xff]  ;;  %v168_v29 = vld [vmem:[#allocation5 + $0x8] sm:$0xff] }
  0x3e   :  { %v167_v32 = vld [vmem:[#allocation5] sm:$0xff]  ;;  %p406_p0 = pnand %p405_p13, %p399_p10 }
  0x3f   :  { %299 = vmatpush3.bf16.msra.mxu0 %v296_v5 }
  0x40   :  { %301 = vmatprep.subr.bf16.mxu0 %v300_v8 }
  0x43   :  { %303 = vmatpush3.bf16.msra.mxu0 %v300_v8 }
  0x44   :  { %305 = vmatprep.subr.bf16.mxu0 %v304_v12 }
  0x47   :  { %307 = vmatpush3.bf16.msra.mxu0 %v304_v12 }
  0x48   :  { %309 = vmatprep.subr.bf16.mxu0 %v308_v15 }
  0x4b   :  { %311 = vmatpush3.bf16.msra.mxu0 %v308_v15 }
  0x4c   :  { %313 = vmatprep.subr.bf16.mxu0 %v312_v18 }
  0x4f   :  { %315 = vmatpush3.bf16.msra.mxu0 %v312_v18 }
  0x50   :  { %317 = vmatprep.subr.bf16.mxu0 %v316_v21 }
  0x53   :  { %319 = vmatpush3.bf16.msra.mxu0 %v316_v21 }
  0x54   :  { %321 = vmatprep.subr.bf16.mxu0 %v320_v24 }
  0x57   :  { %323 = vmatpush3.bf16.msra.mxu0 %v320_v24 }
  0x5a   :  { %290 = vmatmul.mubr.f32.vlgmr.msra.gmra.mrb[0].mxu0 %v68_v25 }
 0x12d   :  { %v291_v28 = vpop.f32.mrb[0].mxu0 }
 0x12e   :  { %v164_v30 = vadd.f32 %v291_v28, %v238_v27  ;;  %v158_v31 = vpop.f32.mrb[1].mxu0 }
 0x12f   :  { %v159_v33 = vadd.f32 %v238_v27, %v158_v31 }
 0x130   :  { %v170_v34 = vadd.f32 %v168_v29, %v164_v30 }
 0x131   :  { %v169_v35 = vadd.f32 %v167_v32, %v159_v33 }
 0x132   :  { %v196_v36 = vmul.f32 %v170_v34, %v170_v34  ;;  %172 = vst [vmem:[#allocation8 + $0x8] sm:$0xff] %v170_v34 }
 0x133   :  { %v185_v37 = vadd.f32 %v170_v34, %v169_v35  ;;  %v195_v38 = vmul.f32 %v169_v35, %v169_v35  ;;  %171 = vst [vmem:[#allocation8] sm:$0xff] %v169_v35 }
 0x134   :  { %409 = shalt.err (!%p406_p0)
}
 0x135   :  { %s410_s11 = scalar_lea.hbm %s574_s4, 256 }
 0x136   :  { %p411_p1 = scmp.ne.s32.totalorder %s574_s4, %s410_s11  ;;  %p414_p2 = scmp.lt.u32.totalorder %s410_s11, %s574_s4 }
 0x138   :  { %p416_p3 = pnand %p414_p2, %p411_p1 }
 0x13a   :  { %419 = shalt.err (!%p416_p3)
}
 0x13b   :  { %217 = dma.vmem_to_hbm [thread:$0]  %s212_s8, 256, %s574_s4, [#allocation4], %s452_s30, %s452_s30, %s453_s6   ;;  %v186_v39 = vrot.slane %v185_v37, 4  ;;  %v197_v40 = vadd.f32 %v196_v36, %v195_v38  ;;  %v184_v49 = vld [vmem:[#allocation9] sm:$0x1] }
 0x13c   :  { %v194_v52 = vld [vmem:[#allocation9 + $0x1] sm:$0x1]  ;;  %s457_s17 = smov [#allocation9]  }
 0x13d   :  { %v187_v41 = vadd.f32 %v186_v39, %v185_v37  ;;  %v198_v42 = vrot.slane %v197_v40, 4  ;;  %s224_s18 = sshll.u32 %s457_s17, 4  ;;  %s225_s18 = int_to_ptr.vmem [resolvable:$true] %s224_s18 }
 0x13e   :  { %s420_s4 = scalar_lea.vmem %s225_s18, 32  ;;  %p425_p5 = scmp.lt.s32.totalorder %s225_s18, %s225_s18 }
 0x13f   :  { %v188_v43 = vrot.slane %v187_v41, 2  ;;  %v199_v44 = vadd.f32 %v198_v42, %v197_v40  ;;  %p421_p4 = scmp.ne.s32.totalorder %s225_s18, %s420_s4  ;;  %p426_p6 = scmp.lt.s32.totalorder %s420_s4, %s420_s4 }
 0x141   :  { %v189_v45 = vadd.f32 %v188_v43, %v187_v41  ;;  %v200_v46 = vrot.slane %v199_v44, 2  ;;  %p427_p7 = por %p426_p6, %p425_p5 }
 0x143   :  { %v190_v47 = vrot.slane %v189_v45, 1  ;;  %v201_v48 = vadd.f32 %v200_v46, %v199_v44  ;;  %p428_p8 = pnand %p427_p7, %p421_p4 }
 0x145   :  { %v191_v50 = vadd.f32 %v190_v47, %v189_v45  ;;  %v202_v51 = vrot.slane %v201_v48, 1 }
 0x147   :  { %v192_v53 = vadd.f32 %v191_v50, %v184_v49  ;;  %v203_v54 = vadd.f32 %v202_v51, %v201_v48 }
 0x149   :  { %193 = vst [vmem:[#allocation9] sm:$0x1] %v192_v53  ;;  %v204_v55 = vadd.f32 %v203_v54, %v194_v52 }
 0x14b   :  { %205 = vst [vmem:[#allocation9 + $0x1] sm:$0x1] %v204_v55 }
 0x14c   :  { %431 = shalt.err (!%p428_p8)
}
 0x14d   :  { %s432_s19 = scalar_lea.hbm %s575_s5, 32 }
 0x14e   :  { %p433_p9 = scmp.ne.s32.totalorder %s575_s5, %s432_s19  ;;  %p436_p10 = scmp.lt.u32.totalorder %s432_s19, %s575_s5 }
 0x150   :  { %p438_p11 = pnand %p436_p10, %p433_p9 }
 0x152   :  { %441 = shalt.err (!%p438_p11)
}
 0x153   :  { %227 = dma.vmem_to_hbm [thread:$0]  %s225_s18, 32, %s575_s5, [#allocation10]  }
 0x154   :  { %446 = dma.done.wait [#allocation4], 256  }
 0x155   :  { %447 = vsyncadd [#allocation4], 4294967040 }
 0x156   :  { %448 = dma.done.wait [#allocation10], 32  }
 0x157   :  { %449 = vsyncadd [#allocation10], 4294967264 }
 0x158   :  { %234 = vsyncpa [#allocation3], 1 }
 0x159   :  { %235 = vsyncpa [#allocation6], 1 }
 0x15a   :  { %236 = vsyncpa [#allocation4], 1 }
 0x15b   :  { %237 = vsyncpa [#allocation10], 1 }

</bundles_post_ra>
